<compile_context>
chip_gen: v6e
topology: v6e:2x2x1
jax: 0.10.0
libtpu: 0.0.40
codegen_flags: <defaults>
</compile_context>

<pallas_src>
import functools

import jax
import jax.numpy as jnp
from jax import lax
from jax.experimental import pallas as pl
from jax.experimental.pallas import tpu as pltpu

EPS = 1e-5
_PAD = 8          # sublane-aligned top pad inside the staging scratch


def _resblock_kernel(x_ref, t1_ref, b1_ref, t2_ref, b2_ref, o_ref, pad_sc, *, H):
    # x_ref / o_ref : (M, WC)     M = NB*H rows, WC = W*C lanes (lane-dense)
    # t{1,2}_ref    : (3, WC, WC) bf16 banded weights (BN scale folded in)
    # b{1,2}_ref    : (1, WC)     folded BN bias (f32)
    # pad_sc        : (M + 2*_PAD, WC) f32 staging scratch for the ky shifts
    M, WC = x_ref.shape
    x = x_ref[...]                                    # exact f32 input / residual

    # Rows whose ky=0 / ky=2 tap would cross an image boundary (including the
    # global top/bottom) are masked; this also makes the scratch halo rows
    # don't-care, so they never need zero-filling.  Computed once, reused.
    row = lax.broadcasted_iota(jnp.int32, (M, WC), 0) % H
    m_top = row != 0
    m_bot = row != (H - 1)

    def conv3x3(center_f32, t_ref):
        # center tap straight from the value; shifted taps from the scratch.
        l0 = jnp.where(m_top, pad_sc[_PAD - 1:_PAD - 1 + M, :], 0.0)
        l2 = jnp.where(m_bot, pad_sc[_PAD + 1:_PAD + 1 + M, :], 0.0)
        acc = jnp.dot(center_f32.astype(jnp.bfloat16), t_ref[1],
                      preferred_element_type=jnp.float32)
        acc += jnp.dot(l0.astype(jnp.bfloat16), t_ref[0],
                       preferred_element_type=jnp.float32)
        acc += jnp.dot(l2.astype(jnp.bfloat16), t_ref[2],
                       preferred_element_type=jnp.float32)
        return acc

    # conv1 -> BN1 (folded) -> ReLU
    pad_sc[_PAD:_PAD + M, :] = x                      # sublane-aligned store
    y1 = jnp.maximum(conv3x3(x, t1_ref) + b1_ref[...], 0.0)

    # conv2 -> BN2 (folded) -> +residual -> ReLU
    pad_sc[_PAD:_PAD + M, :] = y1
    y2 = conv3x3(y1, t2_ref) + b2_ref[...]
    o_ref[...] = jnp.maximum(y2 + x, 0.0)


def _banded_weights(w_oihw, W, scale):
    """OIHW conv weight (+ folded BN scale) -> (3, W*Cin, W*Cout) bf16 bands.

    T[ky, w'*Cin + ci, w*Cout + co] = scale[co] * w[co, ci, ky, w'-w+1]
    if |w'-w| <= 1 else 0, so one matmul over K = W*Cin implements all kx taps
    plus the zero padding along W.
    """
    c_out, c_in, _, _ = w_oihw.shape
    w = jnp.transpose(w_oihw, (2, 3, 1, 0)).astype(jnp.float32)   # (ky,kx,ci,co)
    w = w * scale[None, None, None, :]                            # fold BN scale (f32)
    wp = jnp.arange(W)[:, None]                                   # input col w'
    wq = jnp.arange(W)[None, :]                                   # output col w
    kx = wp - wq + 1
    valid = (kx >= 0) & (kx <= 2)
    t = w[:, jnp.clip(kx, 0, 2)]                                  # (3,W,W,ci,co)
    t = jnp.where(valid[None, :, :, None, None], t, 0.0)
    t = jnp.transpose(t, (0, 1, 3, 2, 4)).reshape(3, W * c_in, W * c_out)
    return t.astype(jnp.bfloat16)


def _fold_bn(gamma, beta, mean, var, conv_bias, W):
    s = gamma / jnp.sqrt(var + EPS)                  # per-channel scale (into weights)
    b = beta + (conv_bias - mean) * s                # per-channel bias
    return (s.astype(jnp.float32),
            jnp.tile(b, W).reshape(1, -1).astype(jnp.float32))


def resblock_pallas(x_nchw, params):
    (w1, cb1, g1, be1, m1, v1, w2, cb2, g2, be2, m2, v2) = params
    N, C, H, W = x_nchw.shape
    WC = W * C

    # Fold BN into the banded weights (scale) and per-channel bias vectors.
    s1, b1 = _fold_bn(g1, be1, m1, v1, cb1, W)
    s2, b2 = _fold_bn(g2, be2, m2, v2, cb2, W)
    t1 = _banded_weights(w1, W, s1)
    t2 = _banded_weights(w2, W, s2)

    # Pack whole batch elements per grid step so the matmul M dim is ~128.
    NB = max(1, min(N, 128 // max(1, H)))
    if (NB * H) % 8 != 0:                 # keep the block row dim sublane-aligned
        NB = N
    steps = pl.cdiv(N, NB)
    Npad = steps * NB
    M = NB * H

    # NCHW -> lane-dense (Npad*H, W*C) slab, channels minor.
    x = jnp.transpose(x_nchw, (0, 2, 3, 1)).reshape(N, H, WC).astype(jnp.float32)
    if Npad != N:
        x = jnp.concatenate([x, jnp.zeros((Npad - N, H, WC), jnp.float32)], axis=0)
    x2 = x.reshape(Npad * H, WC)

    flops = 2 * 3 * 2 * Npad * H * WC * WC           # 2 convs x 3 ky-tap matmuls
    bytes_accessed = (x2.size * 4                    # input (f32 read)
                      + (t1.size + t2.size) * 2      # bf16 banded weights
                      + (b1.size + b2.size) * 4      # folded BN biases
                      + x2.size * 4)                 # output (f32 write)
    cost = pl.CostEstimate(flops=flops, transcendentals=0,
                           bytes_accessed=bytes_accessed)

    out = pl.pallas_call(
        functools.partial(_resblock_kernel, H=H),
        out_shape=jax.ShapeDtypeStruct((Npad * H, WC), jnp.float32),
        grid=(steps,),
        in_specs=[
            pl.BlockSpec((M, WC), lambda n: (n, 0)),          # x slab
            pl.BlockSpec((3, WC, WC), lambda n: (0, 0, 0)),   # banded w1 (+BN1 scale)
            pl.BlockSpec((1, WC), lambda n: (0, 0)),          # BN1 bias
            pl.BlockSpec((3, WC, WC), lambda n: (0, 0, 0)),   # banded w2 (+BN2 scale)
            pl.BlockSpec((1, WC), lambda n: (0, 0)),          # BN2 bias
        ],
        out_specs=pl.BlockSpec((M, WC), lambda n: (n, 0)),
        scratch_shapes=[pltpu.VMEM((M + 2 * _PAD, WC), jnp.float32)],
        compiler_params=pltpu.CompilerParams(
            dimension_semantics=("parallel",)),
        cost_estimate=cost,
    )(x2, t1, b1, t2, b2)

    out = out[:N * H].reshape(N, H, W, C)
    return jnp.transpose(out, (0, 3, 1, 2))           # back to NCHW


def resblock_ref(x_nchw, params):
    """Pure-JAX reference (eval-mode BN), NCHW like PyTorch."""
    (w1, cb1, g1, be1, m1, v1, w2, cb2, g2, be2, m2, v2) = params

    def conv(x, w, b):
        y = lax.conv_general_dilated(x, w, (1, 1), ((1, 1), (1, 1)),
                                     dimension_numbers=('NCHW', 'OIHW', 'NCHW'))
        return y + b.reshape(1, -1, 1, 1)

    def bn(x, g, be, m, v):
        r = lambda a: a.reshape(1, -1, 1, 1)
        return (x - r(m)) / jnp.sqrt(r(v) + EPS) * r(g) + r(be)

    y = jax.nn.relu(bn(conv(x_nchw, w1, cb1), g1, be1, m1, v1))
    y = bn(conv(y, w2, cb2), g2, be2, m2, v2)
    return jax.nn.relu(y + x_nchw)


def make_params(key, num_hidden):
    ks = jax.random.split(key, 10)
    C = num_hidden
    w1 = 0.1 * jax.random.normal(ks[0], (C, C, 3, 3), jnp.float32)
    cb1 = 0.1 * jax.random.normal(ks[1], (C,), jnp.float32)
    g1 = 1.0 + 0.1 * jax.random.normal(ks[2], (C,), jnp.float32)
    be1 = 0.1 * jax.random.normal(ks[3], (C,), jnp.float32)
    m1 = 0.1 * jax.random.normal(ks[4], (C,), jnp.float32)
    v1 = jax.random.uniform(ks[5], (C,), jnp.float32, 0.5, 1.5)
    w2 = 0.1 * jax.random.normal(ks[6], (C, C, 3, 3), jnp.float32)
    cb2 = 0.1 * jax.random.normal(ks[7], (C,), jnp.float32)
    g2 = 1.0 + 0.1 * jax.random.normal(ks[8], (C,), jnp.float32)
    be2 = 0.1 * jax.random.normal(ks[9], (C,), jnp.float32)
    m2 = 0.05 * jnp.ones((C,), jnp.float32)
    v2 = jnp.ones((C,), jnp.float32)
    return (w1, cb1, g1, be1, m1, v1, w2, cb2, g2, be2, m2, v2)


if __name__ == "__main__":
    key = jax.random.PRNGKey(0)
    k_x1, k_p, k_x2 = jax.random.split(key, 3)

    C, H, W = 32, 8, 8                     # num_hidden = 32, small spatial grid
    params = make_params(k_p, C)

    def check(x):
        out = jax.block_until_ready(resblock_pallas(x, params))
        ref = resblock_ref(x, params)
        assert out.shape == x.shape
        # bf16 matmul operands with f32 accumulation -> loosened tolerance
        assert jnp.allclose(out, ref, rtol=2e-2, atol=5e-2), (
            "mismatch vs reference: max abs err = "
            f"{float(jnp.max(jnp.abs(out - ref)))}")

    # Small batch (single grid step) and a larger batch exercising grid
    # iteration plus batch padding.
    check(jax.random.normal(k_x1, (2, C, H, W), jnp.float32))
    check(jax.random.normal(k_x2, (40, C, H, W), jnp.float32))

    print("KERNEL_OK")
</pallas_src>

<mosaic_0001>
module attributes {stable_mosaic.version = 11 : i64} {
  func.func @_resblock_kernel(%arg0: i32, %arg1: memref<16x256xf32, #tpu.memory_space<vmem>>, %arg2: memref<3x256x256xbf16, #tpu.memory_space<vmem>>, %arg3: memref<1x256xf32, #tpu.memory_space<vmem>>, %arg4: memref<3x256x256xbf16, #tpu.memory_space<vmem>>, %arg5: memref<1x256xf32, #tpu.memory_space<vmem>>, %arg6: memref<16x256xf32, #tpu.memory_space<vmem>>, %arg7: memref<32x256xf32, #tpu.memory_space<vmem>>) attributes {dimension_semantics = [#tpu.dimension_semantics<parallel>], iteration_bounds = array<i64: 1>, scalar_prefetch = 0 : i64, scratch_operands = 1 : i64, tpu.core_type = #tpu.core_type<tc>, window_params = [{transform_indices = @transform_0, window_bounds = array<i64: 16, 256>}, {pipeline_mode = #tpu.pipeline_mode<synchronous>, transform_indices = @transform_1, window_bounds = array<i64: 3, 256, 256>}, {pipeline_mode = #tpu.pipeline_mode<synchronous>, transform_indices = @transform_2, window_bounds = array<i64: 1, 256>}, {pipeline_mode = #tpu.pipeline_mode<synchronous>, transform_indices = @transform_3, window_bounds = array<i64: 3, 256, 256>}, {pipeline_mode = #tpu.pipeline_mode<synchronous>, transform_indices = @transform_4, window_bounds = array<i64: 1, 256>}, {transform_indices = @transform_5, window_bounds = array<i64: 16, 256>}]} {
    %c0 = arith.constant 0 : index
    %c0_0 = arith.constant 0 : index
    %0 = vector.load %arg1[%c0, %c0_0] : memref<16x256xf32, #tpu.memory_space<vmem>>, vector<16x256xf32>
    %1 = tpu.iota {dimensions = array<i32: 0>} : vector<16x256xi32>
    %c8_i32 = arith.constant 8 : i32
    %c0_i32 = arith.constant 0 : i32
    %2 = arith.cmpi eq, %c8_i32, %c0_i32 : i32
    %c1_i32 = arith.constant 1 : i32
    %3 = arith.select %2, %c1_i32, %c8_i32 : i32
    %4 = vector.broadcast %3 : i32 to vector<16x256xi32>
    %5 = arith.remsi %1, %4 : vector<16x256xi32>
    %c0_i32_1 = arith.constant 0 : i32
    %6 = vector.broadcast %c0_i32_1 : i32 to vector<16x256xi32>
    %7 = arith.cmpi ne, %5, %6 : vector<16x256xi32>
    %c0_i32_2 = arith.constant 0 : i32
    %8 = vector.broadcast %c0_i32_2 : i32 to vector<16x256xi32>
    %9 = arith.cmpi slt, %5, %8 : vector<16x256xi32>
    %c0_i32_3 = arith.constant 0 : i32
    %10 = arith.cmpi slt, %3, %c0_i32_3 : i32
    %11 = vector.broadcast %10 : i1 to vector<16x256xi1>
    %12 = vector.broadcast %11 : vector<16x256xi1> to vector<16x256xi1>
    %13 = arith.xori %9, %12 : vector<16x256xi1>
    %14 = arith.andi %13, %7 : vector<16x256xi1>
    %15 = vector.broadcast %3 : i32 to vector<16x256xi32>
    %16 = arith.addi %5, %15 : vector<16x256xi32>
    %17 = arith.select %14, %16, %5 : vector<16x256xi1>, vector<16x256xi32>
    %c0_i32_4 = arith.constant 0 : i32
    %18 = vector.broadcast %c0_i32_4 : i32 to vector<16x256xi32>
    %19 = arith.cmpi ne, %17, %18 : vector<16x256xi32>
    %c7_i32 = arith.constant 7 : i32
    %20 = vector.broadcast %c7_i32 : i32 to vector<16x256xi32>
    %21 = arith.cmpi ne, %17, %20 : vector<16x256xi32>
    %c8 = arith.constant 8 : index
    %c0_5 = arith.constant 0 : index
    %22 = vector.load %arg7[%c8, %c0_5] : memref<32x256xf32, #tpu.memory_space<vmem>>, vector<16x256xf32>
    tpu.vector_store %arg7[%c8, %c0_5], %0 {strides = array<i32>} : memref<32x256xf32, #tpu.memory_space<vmem>>, vector<16x256xf32>,
    %c7 = arith.constant 7 : index
    %c0_6 = arith.constant 0 : index
    %23 = vector.load %arg7[%c7, %c0_6] : memref<32x256xf32, #tpu.memory_space<vmem>>, vector<16x256xf32>
    %cst = arith.constant 0.000000e+00 : f32
    %24 = vector.broadcast %cst : f32 to vector<16x256xf32>
    %25 = arith.select %19, %23, %24 : vector<16x256xi1>, vector<16x256xf32>
    %c9 = arith.constant 9 : index
    %c0_7 = arith.constant 0 : index
    %26 = vector.load %arg7[%c9, %c0_7] : memref<32x256xf32, #tpu.memory_space<vmem>>, vector<16x256xf32>
    %cst_8 = arith.constant 0.000000e+00 : f32
    %27 = vector.broadcast %cst_8 : f32 to vector<16x256xf32>
    %28 = arith.select %21, %26, %27 : vector<16x256xi1>, vector<16x256xf32>
    %29 = arith.truncf %0 : vector<16x256xf32> to vector<16x256xbf16>
    %c1 = arith.constant 1 : index
    %c0_9 = arith.constant 0 : index
    %c0_10 = arith.constant 0 : index
    %30 = vector.load %arg2[%c1, %c0_9, %c0_10] : memref<3x256x256xbf16, #tpu.memory_space<vmem>>, vector<1x256x256xbf16>
    %31 = vector.shape_cast %30 : vector<1x256x256xbf16> to vector<256x256xbf16>
    %cst_11 = arith.constant dense<0.000000e+00> : vector<16x256xf32>
    %32 = tpu.matmul %29, %31, %cst_11 {dimension_numbers = #tpu.dot_dimension_numbers<[1], [0], [0], [1], [0, 0, 1, 1], [], []>} : vector<16x256xbf16>, vector<256x256xbf16>, vector<16x256xf32> -> vector<16x256xf32>
    %33 = arith.truncf %25 : vector<16x256xf32> to vector<16x256xbf16>
    %c0_12 = arith.constant 0 : index
    %c0_13 = arith.constant 0 : index
    %c0_14 = arith.constant 0 : index
    %34 = vector.load %arg2[%c0_12, %c0_13, %c0_14] : memref<3x256x256xbf16, #tpu.memory_space<vmem>>, vector<1x256x256xbf16>
    %35 = vector.shape_cast %34 : vector<1x256x256xbf16> to vector<256x256xbf16>
    %cst_15 = arith.constant dense<0.000000e+00> : vector<16x256xf32>
    %36 = tpu.matmul %33, %35, %cst_15 {dimension_numbers = #tpu.dot_dimension_numbers<[1], [0], [0], [1], [0, 0, 1, 1], [], []>} : vector<16x256xbf16>, vector<256x256xbf16>, vector<16x256xf32> -> vector<16x256xf32>
    %37 = arith.addf %32, %36 : vector<16x256xf32>
    %38 = arith.truncf %28 : vector<16x256xf32> to vector<16x256xbf16>
    %c2 = arith.constant 2 : index
    %c0_16 = arith.constant 0 : index
    %c0_17 = arith.constant 0 : index
    %39 = vector.load %arg2[%c2, %c0_16, %c0_17] : memref<3x256x256xbf16, #tpu.memory_space<vmem>>, vector<1x256x256xbf16>
    %40 = vector.shape_cast %39 : vector<1x256x256xbf16> to vector<256x256xbf16>
    %cst_18 = arith.constant dense<0.000000e+00> : vector<16x256xf32>
    %41 = tpu.matmul %38, %40, %cst_18 {dimension_numbers = #tpu.dot_dimension_numbers<[1], [0], [0], [1], [0, 0, 1, 1], [], []>} : vector<16x256xbf16>, vector<256x256xbf16>, vector<16x256xf32> -> vector<16x256xf32>
    %42 = arith.addf %37, %41 : vector<16x256xf32>
    %c0_19 = arith.constant 0 : index
    %c0_20 = arith.constant 0 : index
    %43 = vector.load %arg3[%c0_19, %c0_20] : memref<1x256xf32, #tpu.memory_space<vmem>>, vector<1x256xf32>
    %44 = vector.broadcast %43 : vector<1x256xf32> to vector<16x256xf32>
    %45 = arith.addf %42, %44 : vector<16x256xf32>
    %cst_21 = arith.constant 0.000000e+00 : f32
    %46 = vector.broadcast %cst_21 : f32 to vector<16x256xf32>
    %47 = arith.maximumf %45, %46 : vector<16x256xf32>
    %c8_22 = arith.constant 8 : index
    %c0_23 = arith.constant 0 : index
    %48 = vector.load %arg7[%c8_22, %c0_23] : memref<32x256xf32, #tpu.memory_space<vmem>>, vector<16x256xf32>
    tpu.vector_store %arg7[%c8_22, %c0_23], %47 {strides = array<i32>} : memref<32x256xf32, #tpu.memory_space<vmem>>, vector<16x256xf32>,
    %c7_24 = arith.constant 7 : index
    %c0_25 = arith.constant 0 : index
    %49 = vector.load %arg7[%c7_24, %c0_25] : memref<32x256xf32, #tpu.memory_space<vmem>>, vector<16x256xf32>
    %cst_26 = arith.constant 0.000000e+00 : f32
    %50 = vector.broadcast %cst_26 : f32 to vector<16x256xf32>
    %51 = arith.select %19, %49, %50 : vector<16x256xi1>, vector<16x256xf32>
    %c9_27 = arith.constant 9 : index
    %c0_28 = arith.constant 0 : index
    %52 = vector.load %arg7[%c9_27, %c0_28] : memref<32x256xf32, #tpu.memory_space<vmem>>, vector<16x256xf32>
    %cst_29 = arith.constant 0.000000e+00 : f32
    %53 = vector.broadcast %cst_29 : f32 to vector<16x256xf32>
    %54 = arith.select %21, %52, %53 : vector<16x256xi1>, vector<16x256xf32>
    %55 = arith.truncf %47 : vector<16x256xf32> to vector<16x256xbf16>
    %c1_30 = arith.constant 1 : index
    %c0_31 = arith.constant 0 : index
    %c0_32 = arith.constant 0 : index
    %56 = vector.load %arg4[%c1_30, %c0_31, %c0_32] : memref<3x256x256xbf16, #tpu.memory_space<vmem>>, vector<1x256x256xbf16>
    %57 = vector.shape_cast %56 : vector<1x256x256xbf16> to vector<256x256xbf16>
    %cst_33 = arith.constant dense<0.000000e+00> : vector<16x256xf32>
    %58 = tpu.matmul %55, %57, %cst_33 {dimension_numbers = #tpu.dot_dimension_numbers<[1], [0], [0], [1], [0, 0, 1, 1], [], []>} : vector<16x256xbf16>, vector<256x256xbf16>, vector<16x256xf32> -> vector<16x256xf32>
    %59 = arith.truncf %51 : vector<16x256xf32> to vector<16x256xbf16>
    %c0_34 = arith.constant 0 : index
    %c0_35 = arith.constant 0 : index
    %c0_36 = arith.constant 0 : index
    %60 = vector.load %arg4[%c0_34, %c0_35, %c0_36] : memref<3x256x256xbf16, #tpu.memory_space<vmem>>, vector<1x256x256xbf16>
    %61 = vector.shape_cast %60 : vector<1x256x256xbf16> to vector<256x256xbf16>
    %cst_37 = arith.constant dense<0.000000e+00> : vector<16x256xf32>
    %62 = tpu.matmul %59, %61, %cst_37 {dimension_numbers = #tpu.dot_dimension_numbers<[1], [0], [0], [1], [0, 0, 1, 1], [], []>} : vector<16x256xbf16>, vector<256x256xbf16>, vector<16x256xf32> -> vector<16x256xf32>
    %63 = arith.addf %58, %62 : vector<16x256xf32>
    %64 = arith.truncf %54 : vector<16x256xf32> to vector<16x256xbf16>
    %c2_38 = arith.constant 2 : index
    %c0_39 = arith.constant 0 : index
    %c0_40 = arith.constant 0 : index
    %65 = vector.load %arg4[%c2_38, %c0_39, %c0_40] : memref<3x256x256xbf16, #tpu.memory_space<vmem>>, vector<1x256x256xbf16>
    %66 = vector.shape_cast %65 : vector<1x256x256xbf16> to vector<256x256xbf16>
    %cst_41 = arith.constant dense<0.000000e+00> : vector<16x256xf32>
    %67 = tpu.matmul %64, %66, %cst_41 {dimension_numbers = #tpu.dot_dimension_numbers<[1], [0], [0], [1], [0, 0, 1, 1], [], []>} : vector<16x256xbf16>, vector<256x256xbf16>, vector<16x256xf32> -> vector<16x256xf32>
    %68 = arith.addf %63, %67 : vector<16x256xf32>
    %c0_42 = arith.constant 0 : index
    %c0_43 = arith.constant 0 : index
    %69 = vector.load %arg5[%c0_42, %c0_43] : memref<1x256xf32, #tpu.memory_space<vmem>>, vector<1x256xf32>
    %70 = vector.broadcast %69 : vector<1x256xf32> to vector<16x256xf32>
    %71 = arith.addf %68, %70 : vector<16x256xf32>
    %72 = arith.addf %71, %0 : vector<16x256xf32>
    %cst_44 = arith.constant 0.000000e+00 : f32
    %73 = vector.broadcast %cst_44 : f32 to vector<16x256xf32>
    %74 = arith.maximumf %72, %73 : vector<16x256xf32>
    %c0_45 = arith.constant 0 : index
    %c0_46 = arith.constant 0 : index
    %75 = vector.load %arg6[%c0_45, %c0_46] : memref<16x256xf32, #tpu.memory_space<vmem>>, vector<16x256xf32>
    tpu.vector_store %arg6[%c0_45, %c0_46], %74 {strides = array<i32>} : memref<16x256xf32, #tpu.memory_space<vmem>>, vector<16x256xf32>,
    return
  }
  func.func @transform_0(%arg0: i32) -> (i32, i32) {
    %c0_i32 = arith.constant 0 : i32
    %c0_i32_0 = arith.constant 0 : i32
    return %arg0, %c0_i32 : i32, i32
  }
  func.func @transform_1(%arg0: i32) -> (i32, i32, i32) {
    %c0_i32 = arith.constant 0 : i32
    %c0_i32_0 = arith.constant 0 : i32
    %c0_i32_1 = arith.constant 0 : i32
    %c0_i32_2 = arith.constant 0 : i32
    return %c0_i32, %c0_i32_0, %c0_i32_1 : i32, i32, i32
  }
  func.func @transform_2(%arg0: i32) -> (i32, i32) {
    %c0_i32 = arith.constant 0 : i32
    %c0_i32_0 = arith.constant 0 : i32
    %c0_i32_1 = arith.constant 0 : i32
    return %c0_i32, %c0_i32_0 : i32, i32
  }
  func.func @transform_3(%arg0: i32) -> (i32, i32, i32) {
    %c0_i32 = arith.constant 0 : i32
    %c0_i32_0 = arith.constant 0 : i32
    %c0_i32_1 = arith.constant 0 : i32
    %c0_i32_2 = arith.constant 0 : i32
    return %c0_i32, %c0_i32_0, %c0_i32_1 : i32, i32, i32
  }
  func.func @transform_4(%arg0: i32) -> (i32, i32) {
    %c0_i32 = arith.constant 0 : i32
    %c0_i32_0 = arith.constant 0 : i32
    %c0_i32_1 = arith.constant 0 : i32
    return %c0_i32, %c0_i32_0 : i32, i32
  }
  func.func @transform_5(%arg0: i32) -> (i32, i32) {
    %c0_i32 = arith.constant 0 : i32
    %c0_i32_0 = arith.constant 0 : i32
    return %arg0, %c0_i32 : i32, i32
  }
}

</mosaic_0001>

<bundles_post_ra>
// kernel: tpu_custom_call.1
= control target key start
LH: loop header
LB: loop body
LE: loop exit
PB: predicated region body
PF: predicated region fallthrough
CT: control target
= control target key end

     0   :  { %10 = vsyncpa [#allocation4], 0  ;;  %s2479_s0 = inlined_call_operand.hbm [shape: f32[16,256], index: 0, kind: input, shape index: {}]   ;;  %s2480_s1 = inlined_call_operand.hbm [shape: bf16[3,256,256], index: 1, kind: input, shape index: {}]   ;;  %s2481_s2 = inlined_call_operand.vmem [shape: f32[1,256], index: 2, kind: input, shape index: {}]   ;;  %s2482_s3 = inlined_call_operand.hbm [shape: bf16[3,256,256], index: 3, kind: input, shape index: {}]   ;;  %s2483_s4 = inlined_call_operand.vmem [shape: f32[1,256], index: 4, kind: input, shape index: {}]   ;;  %s2484_s5 = inlined_call_operand.hbm [shape: f32[16,256], index: 5, kind: output, shape index: {}]  }
   0x1   :  { %11 = vsyncpa [#allocation7], 0 }
   0x2   :  { %12 = vsyncpa [#allocation5], 0  ;;  %s2325_s18 = smov [#allocation6]  }
   0x3   :  { %s30_s19 = sshll.u32 %s2325_s18, 4  ;;  %s31_s19 = int_to_ptr.vmem [resolvable:$true] %s30_s19 }
   0x4   :  { %s2247_s20 = scalar_lea.vmem %s31_s19, 12288  ;;  %p2252_p1 = scmp.lt.s32.totalorder %s31_s19, %s31_s19 }
   0x5   :  { %p2248_p0 = scmp.ne.s32.totalorder %s31_s19, %s2247_s20  ;;  %p2253_p2 = scmp.lt.s32.totalorder %s2247_s20, %s2247_s20 }
   0x7   :  { %p2254_p3 = por %p2253_p2, %p2252_p1 }
   0x9   :  { %p2255_p4 = pnand %p2254_p3, %p2248_p0 }
   0xb   :  { %2258 = shalt.err (!%p2255_p4)
}
   0xc   :  { %s2326_s21 = smov 128   ;;  %s2327_s22 = smov 8  }
   0xd   :  { %36 = dma.hbm_to_vmem [thread:$0]  %s2480_s1, 12288, %s31_s19, [#allocation7], %s2326_s21, %s2326_s21, %s2327_s22  }
   0xe   :  { %s2328_s25 = smov [#allocation3]  }
   0xf   :  { %s18_s26 = sshll.u32 %s2328_s25, 4  ;;  %s19_s26 = int_to_ptr.vmem [resolvable:$true] %s18_s26 }
  0x10   :  { %s2267_s27 = scalar_lea.vmem %s19_s26, 512  ;;  %p2272_p6 = scmp.lt.s32.totalorder %s19_s26, %s19_s26 }
  0x11   :  { %p2268_p5 = scmp.ne.s32.totalorder %s19_s26, %s2267_s27  ;;  %p2273_p7 = scmp.lt.s32.totalorder %s2267_s27, %s2267_s27 }
  0x13   :  { %p2274_p8 = por %p2273_p7, %p2272_p6 }
  0x15   :  { %p2275_p9 = pnand %p2274_p8, %p2268_p5 }
  0x17   :  { %2278 = shalt.err (!%p2275_p9)
}
  0x18   :  { %s2329_s28 = smov 256   ;;  %s2330_s29 = smov 16  }
  0x19   :  { %24 = dma.hbm_to_vmem [thread:$0]  %s2479_s0, 512, %s19_s26, [#allocation4], %s2329_s28, %s2329_s28, %s2330_s29  }
  0x1a   :  { %s2331_s1 = smov [#allocation8]  }
  0x1b   :  { %s44_s7 = sshll.u32 %s2331_s1, 4  ;;  %s45_s7 = int_to_ptr.vmem [resolvable:$true] %s44_s7 }
  0x1c   :  { %s2287_s8 = scalar_lea.vmem %s45_s7, 12288  ;;  %p2292_p11 = scmp.lt.s32.totalorder %s45_s7, %s45_s7 }
  0x1d   :  { %p2288_p10 = scmp.ne.s32.totalorder %s45_s7, %s2287_s8  ;;  %p2293_p12 = scmp.lt.s32.totalorder %s2287_s8, %s2287_s8 }
  0x1f   :  { %p2294_p13 = por %p2293_p12, %p2292_p11 }
  0x21   :  { %p2295_p0 = pnand %p2294_p13, %p2288_p10 }
  0x23   :  { %2298 = shalt.err (!%p2295_p0)
}
  0x24   :  { %50 = dma.hbm_to_vmem [thread:$0]  %s2482_s3, 12288, %s45_s7, [#allocation7], %s2326_s21, %s2326_s21, %s2327_s22  }
  0x25   :  { %2319 = dma.done.wait [#allocation4], 512  }
  0x26   :  { %2320 = vsyncadd [#allocation4], 4294966784 }
  0x27   :  { %2321 = dma.done.wait [#allocation7], 24576  }
  0x28   :  { %2322 = vsyncadd [#allocation7], 4294942720  ;;  %v1951_v0 = vld [vmem:[#allocation6 + $0x74] ss:$8 sps:$4 sm:$0xff]   ;;  %v1955_v2 = vld [vmem:[#allocation6 + $0x70] ss:$8 sps:$4 sm:$0xff]   ;;  %v66_v41 = vlaneseq }
  0x29   :  { %v1953_v1 = vld [vmem:[#allocation6 + $0x174] ss:$8 sps:$4 sm:$0xff]   ;;  %392 = vmatprep.subr.bf16.mxu0 %v1951_v0  ;;  %v1956_v3 = vld [vmem:[#allocation6 + $0x170] ss:$8 sps:$4 sm:$0xff]   ;;  %v1957_v4 = vld [vmem:[#allocation6 + $0x64] ss:$8 sps:$4 sm:$0xff]  }
  0x2a   :  { %595 = vmatprep.subr.bf16.mxu1 %v1953_v1  ;;  %393 = vmatpush1.bf16.msra.mxu0 %v1955_v2  ;;  %v1959_v5 = vld [vmem:[#allocation6 + $0x164] ss:$8 sps:$4 sm:$0xff]   ;;  %v1961_v6 = vld [vmem:[#allocation6 + $0x60] ss:$8 sps:$4 sm:$0xff]   ;;  %v1963_v8 = vld [vmem:[#allocation6 + $0x54] ss:$8 sps:$4 sm:$0xff]  }
  0x2b   :  { %596 = vmatpush1.bf16.msra.mxu1 %v1956_v3  ;;  %394 = vmatprep.subr.bf16.mxu0 %v1957_v4  ;;  %v1962_v7 = vld [vmem:[#allocation6 + $0x160] ss:$8 sps:$4 sm:$0xff]   ;;  %v1965_v9 = vld [vmem:[#allocation6 + $0x154] ss:$8 sps:$4 sm:$0xff]   ;;  %v1967_v10 = vld [vmem:[#allocation6 + $0x50] ss:$8 sps:$4 sm:$0xff]  }
  0x2c   :  { %597 = vmatprep.subr.bf16.mxu1 %v1959_v5  ;;  %v1968_v11 = vld [vmem:[#allocation6 + $0x150] ss:$8 sps:$4 sm:$0xff]   ;;  %v1969_v12 = vld [vmem:[#allocation6 + $0x44] ss:$8 sps:$4 sm:$0xff]   ;;  %v1973_v14 = vld [vmem:[#allocation6 + $0x40] ss:$8 sps:$4 sm:$0xff]  }
  0x2d   :  { %v1971_v13 = vld [vmem:[#allocation6 + $0x144] ss:$8 sps:$4 sm:$0xff]   ;;  %v1974_v15 = vld [vmem:[#allocation6 + $0x140] ss:$8 sps:$4 sm:$0xff]   ;;  %v1975_v16 = vld [vmem:[#allocation6 + $0x34] ss:$8 sps:$4 sm:$0xff]  }
  0x2e   :  { %395 = vmatpush1.bf16.msra.mxu0 %v1961_v6  ;;  %v1977_v17 = vld [vmem:[#allocation6 + $0x134] ss:$8 sps:$4 sm:$0xff]   ;;  %v1979_v18 = vld [vmem:[#allocation6 + $0x30] ss:$8 sps:$4 sm:$0xff]   ;;  %v1981_v20 = vld [vmem:[#allocation6 + $0x24] ss:$8 sps:$4 sm:$0xff]  }
  0x2f   :  { %598 = vmatpush1.bf16.msra.mxu1 %v1962_v7  ;;  %396 = vmatprep.subr.bf16.mxu0 %v1963_v8  ;;  %v1980_v19 = vld [vmem:[#allocation6 + $0x130] ss:$8 sps:$4 sm:$0xff]   ;;  %v1983_v21 = vld [vmem:[#allocation6 + $0x124] ss:$8 sps:$4 sm:$0xff]   ;;  %v1985_v22 = vld [vmem:[#allocation6 + $0x20] ss:$8 sps:$4 sm:$0xff]  }
  0x30   :  { %599 = vmatprep.subr.bf16.mxu1 %v1965_v9  ;;  %v1986_v23 = vld [vmem:[#allocation6 + $0x120] ss:$8 sps:$4 sm:$0xff]   ;;  %v1987_v24 = vld [vmem:[#allocation6 + $0x14] ss:$8 sps:$4 sm:$0xff]   ;;  %v1991_v26 = vld [vmem:[#allocation6 + $0x10] ss:$8 sps:$4 sm:$0xff]  }
  0x31   :  { %v1989_v25 = vld [vmem:[#allocation6 + $0x114] ss:$8 sps:$4 sm:$0xff]   ;;  %v1992_v27 = vld [vmem:[#allocation6 + $0x110] ss:$8 sps:$4 sm:$0xff]   ;;  %v1993_v28 = vld [vmem:[#allocation6 + $0x4] ss:$8 sps:$4 sm:$0xff]  }
  0x32   :  { %397 = vmatpush1.bf16.msra.mxu0 %v1967_v10  ;;  %v1995_v29 = vld [vmem:[#allocation6 + $0x104] ss:$8 sps:$4 sm:$0xff]   ;;  %v1997_v30 = vld [vmem:[#allocation6] ss:$8 sps:$4 sm:$0xff]   ;;  %v1999_v32 = vld [vmem:[#allocation6 + $0xf4] ss:$8 sps:$4 sm:$0xff]  }
  0x33   :  { %600 = vmatpush1.bf16.msra.mxu1 %v1968_v11  ;;  %398 = vmatprep.subr.bf16.mxu0 %v1969_v12  ;;  %v1998_v31 = vld [vmem:[#allocation6 + $0x100] ss:$8 sps:$4 sm:$0xff]   ;;  %v2001_v33 = vld [vmem:[#allocation6 + $0x1f4] ss:$8 sps:$4 sm:$0xff]   ;;  %v2003_v34 = vld [vmem:[#allocation6 + $0xf0] ss:$8 sps:$4 sm:$0xff]  }
  0x34   :  { %601 = vmatprep.subr.bf16.mxu1 %v1971_v13  ;;  %v2004_v35 = vld [vmem:[#allocation6 + $0x1f0] ss:$8 sps:$4 sm:$0xff]   ;;  %v2005_v36 = vld [vmem:[#allocation6 + $0xe4] ss:$8 sps:$4 sm:$0xff]   ;;  %v2009_v38 = vld [vmem:[#allocation6 + $0xe0] ss:$8 sps:$4 sm:$0xff]  }
  0x35   :  { %v2007_v37 = vld [vmem:[#allocation6 + $0x1e4] ss:$8 sps:$4 sm:$0xff]   ;;  %v2010_v39 = vld [vmem:[#allocation6 + $0x1e0] ss:$8 sps:$4 sm:$0xff]   ;;  %v2011_v40 = vld [vmem:[#allocation6 + $0xd4] ss:$8 sps:$4 sm:$0xff]  }
  0x36   :  { %399 = vmatpush1.bf16.msra.mxu0 %v1973_v14  ;;  %v2013_v42 = vld [vmem:[#allocation6 + $0x1d4] ss:$8 sps:$4 sm:$0xff]   ;;  %v2015_v43 = vld [vmem:[#allocation6 + $0xd0] ss:$8 sps:$4 sm:$0xff]   ;;  %v2017_v45 = vld [vmem:[#allocation6 + $0xc4] ss:$8 sps:$4 sm:$0xff]  }
  0x37   :  { %602 = vmatpush1.bf16.msra.mxu1 %v1974_v15  ;;  %400 = vmatprep.subr.bf16.mxu0 %v1975_v16  ;;  %v2016_v44 = vld [vmem:[#allocation6 + $0x1d0] ss:$8 sps:$4 sm:$0xff]   ;;  %v2375_v46 = vshrl.u32 %v66_v41, 7  ;;  %v2019_v47 = vld [vmem:[#allocation6 + $0x1c4] ss:$8 sps:$4 sm:$0xff]   ;;  %vm113_vm0 = vcmask 1040384  }
  0x38   :  { %603 = vmatprep.subr.bf16.mxu1 %v1977_v17  ;;  %v2021_v48 = vld [vmem:[#allocation6 + $0xc0] ss:$8 sps:$4 sm:$0xff]   ;;  %v2023_v51 = vld [vmem:[#allocation6 + $0xb4] ss:$8 sps:$4 sm:$0xff]   ;;  %v102_v58 = vld [vmem:[#allocation2] sm:$0x80] }
  0x39   :  { %v2377_v49 = vld [vmem:[#allocation3 + $0x8] sm:$0xff]  ;;  %v2379_v52 = vld [vmem:[#allocation3 + $0x18] sm:$0xff]  ;;  %v2383_v54 = vadd.s32 8, %v2375_v46  ;;  %v2388_v56 = vld [vmem:[#allocation3] sm:$0xff]  ;;  %v73_v59 = vand.u32 7, %v2375_v46  ;;  %v117_v0 = vrot.slane %v102_v58, 7 }
  0x3a   :  { %401 = vmatpush1.bf16.msra.mxu0 %v1979_v18  ;;  %v2022_v50 = vld [vmem:[#allocation6 + $0x1c0] ss:$8 sps:$4 sm:$0xff]   ;;  %98 = vst [vmem:[#allocation2 + $0x10] sm:$0xff] %v2377_v49  ;;  %v2025_v53 = vld [vmem:[#allocation6 + $0x1b4] ss:$8 sps:$4 sm:$0xff]   ;;  %100 = vst [vmem:[#allocation2 + $0x20] sm:$0xff] %v2379_v52  ;;  %v164_v55 = vpack.c.bf16 %v2379_v52, %v2377_v49 }
  0x3b   :  { %604 = vmatpush1.bf16.msra.mxu1 %v1980_v19  ;;  %402 = vmatprep.subr.bf16.mxu0 %v1981_v20  ;;  %v2390_v57 = vld [vmem:[#allocation3 + $0x10] sm:$0xff]  ;;  %97 = vst [vmem:[#allocation2 + $0x30] sm:$0xff] %v2388_v56  ;;  %v2029_v62 = vld [vmem:[#allocation6 + $0xa4] ss:$8 sps:$4 sm:$0xff]   ;;  %v80_v63 = vand.u32 7, %v2383_v54  ;;  %v118_v1 = vrot.slane %v2377_v49, 7 }
  0x3c   :  { %605 = vmatprep.subr.bf16.mxu1 %v1983_v21  ;;  %99 = vst [vmem:[#allocation2 + $0x28] sm:$0xff] %v2390_v57  ;;  %627 = vmatprep.mubr.bf16.mxu1 %v164_v55  ;;  %v2027_v60 = vld [vmem:[#allocation6 + $0xb0] ss:$8 sps:$4 sm:$0xff]   ;;  %v2031_v2 = vld [vmem:[#allocation6 + $0x1a4] ss:$8 sps:$4 sm:$0xff]   ;;  %vm2397_vm1 = vcmp.ne.s32.totalorder %v73_v59, 0 }
  0x3d   :  { %v2028_v61 = vld [vmem:[#allocation6 + $0x1b0] ss:$8 sps:$4 sm:$0xff]   ;;  %v2033_v3 = vld [vmem:[#allocation6 + $0xa0] ss:$8 sps:$4 sm:$0xff]   ;;  %v2035_v6 = vld [vmem:[#allocation6 + $0x94] ss:$8 sps:$4 sm:$0xff]   ;;  %v119_v9 = vsel %vm113_vm0, %v117_v0, %v118_v1 }
  0x3e   :  { %403 = vmatpush1.bf16.msra.mxu0 %v1985_v22  ;;  %v2034_v5 = vld [vmem:[#allocation6 + $0x1a0] ss:$8 sps:$4 sm:$0xff]   ;;  %v2037_v8 = vld [vmem:[#allocation6 + $0x194] ss:$8 sps:$4 sm:$0xff]   ;;  %vm94_vm2 = vcmp.ne.s32.totalorder %v80_v63, 0  ;;  %v115_v19 = vrot.slane %v2388_v56, 7 }
  0x3f   :  { %606 = vmatpush1.bf16.msra.mxu1 %v1986_v23  ;;  %404 = vmatprep.subr.bf16.mxu0 %v1987_v24  ;;  %v101_v11 = vld [vmem:[#allocation2 + $0x18] sm:$0x80]  ;;  %v2039_v13 = vld [vmem:[#allocation6 + $0x90] ss:$8 sps:$4 sm:$0xff]   ;;  %vm2405_vm3 = vmpackc.low %vm94_vm2, %vm2397_vm1  ;;  %vm95_vm4 = vcmp.ne.s32.totalorder %v73_v59, 7  ;;  %vm96_vm5 = vcmp.ne.s32.totalorder %v80_v63, 7 }
  0x40   :  { %607 = vmatprep.subr.bf16.mxu1 %v1989_v25  ;;  %v2040_v14 = vld [vmem:[#allocation6 + $0x190] ss:$8 sps:$4 sm:$0xff]   ;;  %v114_v18 = vrot.slane %v101_v11, 7  ;;  %v2041_v21 = vld [vmem:[#allocation6 + $0x84] ss:$8 sps:$4 sm:$0xff]   ;;  %vm144_vm6 = vcmask 1046528   ;;  %vm2419_vm7 = vmpackc.low %vm96_vm5, %vm95_vm4 }
  0x41   :  { %v106_v7 = vld [vmem:[#allocation2 + $0x20] sm:$0x7f]  ;;  %v2065_v54 = vld [vmem:[#allocation6 + $0x210] ss:$8 sps:$4 sm:$0xff]   ;;  %v2073_v59 = vld [vmem:[#allocation6 + $0x2f4] ss:$8 sps:$4 sm:$0xff]  }
  0x42   :  { %405 = vmatpush1.bf16.msra.mxu0 %v1991_v26  ;;  %v122_v10 = vrot.slane %v106_v7, 7  ;;  %v2043_v22 = vld [vmem:[#allocation6 + $0x184] ss:$8 sps:$4 sm:$0xff]   ;;  %v2045_v23 = vld [vmem:[#allocation6 + $0x80] ss:$8 sps:$4 sm:$0xff]   ;;  %v116_v25 = vsel %vm113_vm0, %v114_v18, %v115_v19 }
  0x43   :  { %608 = vmatpush1.bf16.msra.mxu1 %v1992_v27  ;;  %406 = vmatprep.subr.bf16.mxu0 %v1993_v28  ;;  %v105_v12 = vld [vmem:[#allocation2 + $0x28] sm:$0x7f]  ;;  %v2049_v27 = vld [vmem:[#allocation6 + $0x274] ss:$8 sps:$4 sm:$0xff]   ;;  %v2077_v0 = vld [vmem:[#allocation6 + $0x2d0] ss:$8 sps:$4 sm:$0xff]  }
  0x44   :  { %609 = vmatprep.subr.bf16.mxu1 %v1995_v29  ;;  %v123_v15 = vsel %vm113_vm0, %v118_v1, %v122_v10  ;;  %v120_v20 = vrot.slane %v105_v12, 7  ;;  %v2046_v24 = vld [vmem:[#allocation6 + $0x180] ss:$8 sps:$4 sm:$0xff]   ;;  %v163_v29 = vpack.c.bf16 %v2390_v57, %v2388_v56  ;;  %v2070_v55 = vld [vmem:[#allocation6 + $0x204] ss:$8 sps:$4 sm:$0xff]   ;;  %v146_v12 = vrot.slane %v2390_v57, 1 }
  0x45   :  { %v1760_v17 = vpack.c.bf16 %v123_v15, %v119_v9  ;;  %v2068_v58 = vld [vmem:[#allocation6 + $0x200] ss:$8 sps:$4 sm:$0xff]   ;;  %v2079_v63 = vld [vmem:[#allocation6 + $0x2d4] ss:$8 sps:$4 sm:$0xff]   ;;  %v2082_v1 = vld [vmem:[#allocation6 + $0x2c4] ss:$8 sps:$4 sm:$0xff]  }
  0x46   :  { %407 = vmatpush1.bf16.msra.mxu0 %v1997_v30  ;;  %v121_v26 = vsel %vm113_vm0, %v115_v19, %v120_v20  ;;  %v2047_v30 = vld [vmem:[#allocation6 + $0x270] ss:$8 sps:$4 sm:$0xff]   ;;  %v2091_v7 = vld [vmem:[#allocation6 + $0x294] ss:$8 sps:$4 sm:$0xff]   ;;  %v136_v9 = vld [vmem:[#allocation2 + $0x8] sm:$0x1] }
  0x47   :  { %610 = vmatpush1.bf16.msra.mxu1 %v1998_v31  ;;  %408 = vmatprep.subr.bf16.mxu0 %v1999_v32  ;;  %v1763_v28 = vpack.c.bf16 %v121_v26, %v116_v25  ;;  %v2052_v31 = vld [vmem:[#allocation6 + $0x264] ss:$8 sps:$4 sm:$0xff]   ;;  %v149_v32 = vrot.slane %v2379_v52, 1  ;;  %v2083_v4 = vld [vmem:[#allocation6 + $0x2b0] ss:$8 sps:$4 sm:$0xff]  }
  0x48   :  { %611 = vmatprep.subr.bf16.mxu1 %v2001_v33  ;;  %1761 = vmatprep.mubr.msk.bf16.mxu0 %vm2405_vm3, %v1760_v17  ;;  %v133_v33 = vld [vmem:[#allocation2 + $0x10] sm:$0xfe]  ;;  %v2092_v15 = vld [vmem:[#allocation6 + $0x280] ss:$8 sps:$4 sm:$0xff]   ;;  %v2112_v26 = vld [vmem:[#allocation8 + $0x64] ss:$8 sps:$4 sm:$0xff]  }
  0x49   :  { %v2089_v10 = vld [vmem:[#allocation6 + $0x290] ss:$8 sps:$4 sm:$0xff]   ;;  %v2098_v25 = vld [vmem:[#allocation8 + $0x160] ss:$8 sps:$4 sm:$0xff]   ;;  %v2208_v16 = vld [vmem:[#allocation8 + $0x224] ss:$8 sps:$4 sm:$0xff]  }
  0x4a   :  { %409 = vmatpush2.bf16.msra.mxu0 %v2003_v34  ;;  %v137_v34 = vld [vmem:[#allocation2 + $0x38] sm:$0x1] }
  0x4b   :  { %612 = vmatpush2.bf16.msra.mxu1 %v2004_v35  ;;  %410 = vmatprep.subr.bf16.mxu0 %v2005_v36  ;;  %v2050_v35 = vld [vmem:[#allocation6 + $0x260] ss:$8 sps:$4 sm:$0xff]   ;;  %v2055_v36 = vld [vmem:[#allocation6 + $0x254] ss:$8 sps:$4 sm:$0xff]   ;;  %v2095_v20 = vld [vmem:[#allocation8 + $0x170] ss:$8 sps:$4 sm:$0xff]  }
  0x4c   :  { %613 = vmatprep.subr.bf16.mxu1 %v2007_v37  ;;  %v148_v37 = vrot.slane %v133_v33, 1  ;;  %v2124_v33 = vld [vmem:[#allocation8 + $0x44] ss:$8 sps:$4 sm:$0xff]  }
  0x4e   :  { %411 = vmatpush2.bf16.msra.mxu0 %v2009_v38  ;;  %v153_v38 = vrot.slane %v137_v34, 1  ;;  %v150_v41 = vsel %vm144_vm6, %v148_v37, %v149_v32  ;;  %v2107_v34 = vld [vmem:[#allocation8 + $0x140] ss:$8 sps:$4 sm:$0xff]   ;;  %v2130_v37 = vld [vmem:[#allocation8 + $0x34] ss:$8 sps:$4 sm:$0xff]  }
  0x4f   :  { %614 = vmatpush2.bf16.msra.mxu1 %v2010_v39  ;;  %412 = vmatprep.subr.bf16.mxu0 %v2011_v40  ;;  %v2053_v40 = vld [vmem:[#allocation6 + $0x250] ss:$8 sps:$4 sm:$0xff]  }
  0x50   :  { %615 = vmatprep.subr.bf16.mxu1 %v2013_v42  ;;  %v154_v42 = vsel %vm144_vm6, %v149_v32, %v153_v38  ;;  %v2116_v32 = vld [vmem:[#allocation8 + $0x50] ss:$8 sps:$4 sm:$0xff]  }
  0x51   :  { %v2113_v38 = vld [vmem:[#allocation8 + $0x130] ss:$8 sps:$4 sm:$0xff]  }
  0x52   :  { %413 = vmatpush2.bf16.msra.mxu0 %v2015_v43  ;;  %v2058_v43 = vld [vmem:[#allocation6 + $0x244] ss:$8 sps:$4 sm:$0xff]  }
  0x53   :  { %616 = vmatpush2.bf16.msra.mxu1 %v2016_v44  ;;  %414 = vmatprep.subr.bf16.mxu0 %v2017_v45  ;;  %v1830_v44 = vpack.c.bf16 %v154_v42, %v150_v41  ;;  %v2056_v45 = vld [vmem:[#allocation6 + $0x240] ss:$8 sps:$4 sm:$0xff]   ;;  %v2128_v41 = vld [vmem:[#allocation8 + $0x30] ss:$8 sps:$4 sm:$0xff]   ;;  %v2136_v42 = vld [vmem:[#allocation8 + $0x24] ss:$8 sps:$4 sm:$0xff]  }
  0x54   :  { %617 = vmatprep.subr.bf16.mxu1 %v2019_v47  ;;  %v2061_v47 = vld [vmem:[#allocation6 + $0x234] ss:$8 sps:$4 sm:$0xff]  }
  0x56   :  { %415 = vmatpush2.bf16.msra.mxu0 %v2021_v48  ;;  %v2059_v48 = vld [vmem:[#allocation6 + $0x230] ss:$8 sps:$4 sm:$0xff]  }
  0x57   :  { %618 = vmatpush2.bf16.msra.mxu1 %v2022_v50  ;;  %416 = vmatprep.subr.bf16.mxu0 %v2023_v51  ;;  %v2064_v50 = vld [vmem:[#allocation6 + $0x224] ss:$8 sps:$4 sm:$0xff]   ;;  %v2062_v51 = vld [vmem:[#allocation6 + $0x220] ss:$8 sps:$4 sm:$0xff]  }
  0x58   :  { %619 = vmatprep.subr.bf16.mxu1 %v2025_v53  ;;  %v2067_v53 = vld [vmem:[#allocation6 + $0x214] ss:$8 sps:$4 sm:$0xff]  }
  0x5a   :  { %417 = vmatpush2.bf16.msra.mxu0 %v2027_v60  ;;  %v2071_v60 = vld [vmem:[#allocation6 + $0x2f0] ss:$8 sps:$4 sm:$0xff]  }
  0x5b   :  { %620 = vmatpush2.bf16.msra.mxu1 %v2028_v61  ;;  %418 = vmatprep.subr.bf16.mxu0 %v2029_v62  ;;  %v2076_v61 = vld [vmem:[#allocation6 + $0x2e4] ss:$8 sps:$4 sm:$0xff]   ;;  %v2074_v62 = vld [vmem:[#allocation6 + $0x2e0] ss:$8 sps:$4 sm:$0xff]  }
  0x5c   :  { %621 = vmatprep.subr.bf16.mxu1 %v2031_v2  ;;  %v2080_v2 = vld [vmem:[#allocation6 + $0x2c0] ss:$8 sps:$4 sm:$0xff]  }
  0x5e   :  { %419 = vmatpush2.bf16.msra.mxu0 %v2033_v3  ;;  %v2085_v3 = vld [vmem:[#allocation6 + $0x2b4] ss:$8 sps:$4 sm:$0xff]  }
  0x5f   :  { %622 = vmatpush2.bf16.msra.mxu1 %v2034_v5  ;;  %420 = vmatprep.subr.bf16.mxu0 %v2035_v6  ;;  %v2088_v5 = vld [vmem:[#allocation6 + $0x2a4] ss:$8 sps:$4 sm:$0xff]   ;;  %v2086_v6 = vld [vmem:[#allocation6 + $0x2a0] ss:$8 sps:$4 sm:$0xff]  }
  0x60   :  { %623 = vmatprep.subr.bf16.mxu1 %v2037_v8  ;;  %v132_v8 = vld [vmem:[#allocation2 + $0x30] sm:$0xfe] }
  0x61   :  { %v145_v11 = vrot.slane %v132_v8, 1  ;;  %v2166_v8 = vld [vmem:[#allocation8 + $0xd4] ss:$8 sps:$4 sm:$0xff]  }
  0x62   :  { %421 = vmatpush2.bf16.msra.mxu0 %v2039_v13  ;;  %v151_v13 = vrot.slane %v136_v9, 1  ;;  %v2164_v9 = vld [vmem:[#allocation8 + $0xd0] ss:$8 sps:$4 sm:$0xff]  }
  0x63   :  { %624 = vmatpush2.bf16.msra.mxu1 %v2040_v14  ;;  %422 = vmatprep.subr.bf16.mxu0 %v2041_v21  ;;  %v2094_v14 = vld [vmem:[#allocation6 + $0x284] ss:$8 sps:$4 sm:$0xff]   ;;  %v147_v17 = vsel %vm144_vm6, %v145_v11, %v146_v12  ;;  %v2097_v21 = vld [vmem:[#allocation8 + $0x174] ss:$8 sps:$4 sm:$0xff]   ;;  %v2167_v11 = vld [vmem:[#allocation8 + $0x1a0] ss:$8 sps:$4 sm:$0xff]  }
  0x64   :  { %625 = vmatprep.subr.bf16.mxu1 %v2043_v22  ;;  %v152_v18 = vsel %vm144_vm6, %v146_v12, %v151_v13  ;;  %v2100_v22 = vld [vmem:[#allocation8 + $0x164] ss:$8 sps:$4 sm:$0xff]   ;;  %v2170_v13 = vld [vmem:[#allocation8 + $0xc0] ss:$8 sps:$4 sm:$0xff]  }
  0x65   :  { %v1833_v19 = vpack.c.bf16 %v152_v18, %v147_v17  ;;  %v2172_v12 = vld [vmem:[#allocation8 + $0xc4] ss:$8 sps:$4 sm:$0xff]   ;;  %v2178_v17 = vld [vmem:[#allocation8 + $0xb4] ss:$8 sps:$4 sm:$0xff]   ;;  %v2176_v18 = vld [vmem:[#allocation8 + $0xb0] ss:$8 sps:$4 sm:$0xff]  }
  0x66   :  { %423 = vmatpush2.bf16.msra.mxu0 %v2045_v23  ;;  %v2104_v23 = vld [vmem:[#allocation8 + $0x70] ss:$8 sps:$4 sm:$0xff]  }
  0x67   :  { %626 = vmatpush2.bf16.msra.mxu1 %v2046_v24  ;;  %833 = vmatprep.subr.bf16.mxu0 %v2049_v27  ;;  %v2106_v24 = vld [vmem:[#allocation8 + $0x74] ss:$8 sps:$4 sm:$0xff]  }
  0x68   :  { %v2103_v27 = vld [vmem:[#allocation8 + $0x154] ss:$8 sps:$4 sm:$0xff]   ;;  %1193 = vmatprep.subr.bf16.mxu1 %v2106_v24 }
  0x69   :  { %1764 = vmatmul.mubr.msk.bf16.vlgmr.msra.gmra.mxu0 %vm2405_vm3, %v1763_v28  ;;  %v2110_v28 = vld [vmem:[#allocation8 + $0x60] ss:$8 sps:$4 sm:$0xff]   ;;  %v2187_v24 = vld [vmem:[#allocation8 + $0x94] ss:$8 sps:$4 sm:$0xff]  }
  0x6a   :  { %628 = vmatmul.mubr.bf16.vlgmr.msra.gmra.mxu1 %v163_v29  ;;  %834 = vmatpush1.bf16.msra.mxu0 %v2047_v30  ;;  %v2118_v29 = vld [vmem:[#allocation8 + $0x54] ss:$8 sps:$4 sm:$0xff]   ;;  %v2101_v30 = vld [vmem:[#allocation8 + $0x150] ss:$8 sps:$4 sm:$0xff]  }
  0x6b   :  { %835 = vmatprep.subr.bf16.mxu0 %v2052_v31  ;;  %1831 = vmatprep.mubr.msk.bf16.mxu0 %vm2419_vm7, %v1830_v44  ;;  %v2109_v31 = vld [vmem:[#allocation8 + $0x144] ss:$8 sps:$4 sm:$0xff]   ;;  %v2127_v44 = vld [vmem:[#allocation8 + $0x114] ss:$8 sps:$4 sm:$0xff]  }
  0x6c   :  { %1194 = vmatpush1.bf16.msra.mxu1 %v2104_v23  ;;  %v2185_v23 = vld [vmem:[#allocation8 + $0x90] ss:$8 sps:$4 sm:$0xff]  }
  0x6d   :  { %1195 = vmatprep.subr.bf16.mxu1 %v2112_v26  ;;  %v2188_v26 = vld [vmem:[#allocation8 + $0x80] ss:$8 sps:$4 sm:$0xff]  }
  0x6e   :  { %836 = vmatpush1.bf16.msra.mxu0 %v2050_v35  ;;  %v2115_v35 = vld [vmem:[#allocation8 + $0x134] ss:$8 sps:$4 sm:$0xff]  }
  0x6f   :  { %837 = vmatprep.subr.bf16.mxu0 %v2055_v36  ;;  %v2122_v36 = vld [vmem:[#allocation8 + $0x40] ss:$8 sps:$4 sm:$0xff]  }
  0x70   :  { %1196 = vmatpush1.bf16.msra.mxu1 %v2110_v28 }
  0x71   :  { %1197 = vmatprep.subr.bf16.mxu1 %v2118_v29 }
  0x72   :  { %838 = vmatpush1.bf16.msra.mxu0 %v2053_v40  ;;  %v2121_v40 = vld [vmem:[#allocation8 + $0x124] ss:$8 sps:$4 sm:$0xff]  }
  0x73   :  { %839 = vmatprep.subr.bf16.mxu0 %v2058_v43  ;;  %v2119_v43 = vld [vmem:[#allocation8 + $0x120] ss:$8 sps:$4 sm:$0xff]  }
  0x74   :  { %1198 = vmatpush1.bf16.msra.mxu1 %v2116_v32 }
  0x75   :  { %1199 = vmatprep.subr.bf16.mxu1 %v2124_v33  ;;  %v884_v33 = vsub.s32 0, %v2375_v46 }
  0x76   :  { %840 = vmatpush1.bf16.msra.mxu0 %v2056_v45  ;;  %v2134_v45 = vld [vmem:[#allocation8 + $0x20] ss:$8 sps:$4 sm:$0xff]  }
  0x77   :  { %841 = vmatprep.subr.bf16.mxu0 %v2061_v47  ;;  %v2142_v47 = vld [vmem:[#allocation8 + $0x14] ss:$8 sps:$4 sm:$0xff]  }
  0x78   :  { %1200 = vmatpush1.bf16.msra.mxu1 %v2122_v36 }
  0x79   :  { %1201 = vmatprep.subr.bf16.mxu1 %v2130_v37 }
  0x7a   :  { %842 = vmatpush1.bf16.msra.mxu0 %v2059_v48  ;;  %v2125_v48 = vld [vmem:[#allocation8 + $0x110] ss:$8 sps:$4 sm:$0xff]  }
  0x7b   :  { %843 = vmatprep.subr.bf16.mxu0 %v2064_v50  ;;  %v2133_v50 = vld [vmem:[#allocation8 + $0x104] ss:$8 sps:$4 sm:$0xff]  }
  0x7c   :  { %1202 = vmatpush1.bf16.msra.mxu1 %v2128_v41 }
  0x7d   :  { %1203 = vmatprep.subr.bf16.mxu1 %v2136_v42 }
  0x7e   :  { %844 = vmatpush1.bf16.msra.mxu0 %v2062_v51  ;;  %v2140_v51 = vld [vmem:[#allocation8 + $0x10] ss:$8 sps:$4 sm:$0xff]  }
  0x7f   :  { %845 = vmatprep.subr.bf16.mxu0 %v2067_v53  ;;  %v2148_v53 = vld [vmem:[#allocation8 + $0x4] ss:$8 sps:$4 sm:$0xff]  }
  0x80   :  { %1204 = vmatpush1.bf16.msra.mxu1 %v2134_v45 }
  0x81   :  { %1205 = vmatprep.subr.bf16.mxu1 %v2142_v47 }
  0x82   :  { %846 = vmatpush1.bf16.msra.mxu0 %v2065_v54  ;;  %v2131_v54 = vld [vmem:[#allocation8 + $0x100] ss:$8 sps:$4 sm:$0xff]  }
  0x83   :  { %847 = vmatprep.subr.bf16.mxu0 %v2070_v55  ;;  %v2139_v55 = vld [vmem:[#allocation8 + $0x1f4] ss:$8 sps:$4 sm:$0xff]  }
  0x84   :  { %1206 = vmatpush1.bf16.msra.mxu1 %v2140_v51 }
  0x85   :  { %1207 = vmatprep.subr.bf16.mxu1 %v2148_v53 }
  0x86   :  { %848 = vmatpush1.bf16.msra.mxu0 %v2068_v58  ;;  %v2146_v58 = vld [vmem:[#allocation8] ss:$8 sps:$4 sm:$0xff]  }
  0x87   :  { %849 = vmatprep.subr.bf16.mxu0 %v2073_v59  ;;  %v2154_v59 = vld [vmem:[#allocation8 + $0xf4] ss:$8 sps:$4 sm:$0xff]  }
  0x88   :  { %1208 = vmatpush1.bf16.msra.mxu1 %v2146_v58 }
  0x89   :  { %1209 = vmatprep.subr.bf16.mxu1 %v2154_v59 }
  0x8a   :  { %850 = vmatpush2.bf16.msra.mxu0 %v2071_v60  ;;  %v2137_v60 = vld [vmem:[#allocation8 + $0x1f0] ss:$8 sps:$4 sm:$0xff]  }
  0x8b   :  { %851 = vmatprep.subr.bf16.mxu0 %v2076_v61  ;;  %v2145_v61 = vld [vmem:[#allocation8 + $0x1e4] ss:$8 sps:$4 sm:$0xff]  }
  0x8e   :  { %852 = vmatpush2.bf16.msra.mxu0 %v2074_v62  ;;  %v2152_v62 = vld [vmem:[#allocation8 + $0xf0] ss:$8 sps:$4 sm:$0xff]  }
  0x8f   :  { %853 = vmatprep.subr.bf16.mxu0 %v2079_v63  ;;  %v2160_v63 = vld [vmem:[#allocation8 + $0xe4] ss:$8 sps:$4 sm:$0xff]   ;;  %1210 = vmatpush2.bf16.msra.mxu1 %v2152_v62 }
  0x90   :  { %1211 = vmatprep.subr.bf16.mxu1 %v2160_v63 }
  0x92   :  { %854 = vmatpush2.bf16.msra.mxu0 %v2077_v0  ;;  %v2143_v0 = vld [vmem:[#allocation8 + $0x1e0] ss:$8 sps:$4 sm:$0xff]  }
  0x93   :  { %855 = vmatprep.subr.bf16.mxu0 %v2082_v1  ;;  %v2151_v1 = vld [vmem:[#allocation8 + $0x1d4] ss:$8 sps:$4 sm:$0xff]  }
  0x96   :  { %856 = vmatpush2.bf16.msra.mxu0 %v2080_v2  ;;  %v2158_v2 = vld [vmem:[#allocation8 + $0xe0] ss:$8 sps:$4 sm:$0xff]  }
  0x97   :  { %857 = vmatprep.subr.bf16.mxu0 %v2085_v3  ;;  %v2149_v3 = vld [vmem:[#allocation8 + $0x1d0] ss:$8 sps:$4 sm:$0xff]   ;;  %1212 = vmatpush2.bf16.msra.mxu1 %v2158_v2 }
  0x98   :  { %1213 = vmatprep.subr.bf16.mxu1 %v2166_v8 }
  0x9a   :  { %858 = vmatpush2.bf16.msra.mxu0 %v2083_v4  ;;  %v2157_v4 = vld [vmem:[#allocation8 + $0x1c4] ss:$8 sps:$4 sm:$0xff]  }
  0x9b   :  { %859 = vmatprep.subr.bf16.mxu0 %v2088_v5  ;;  %v2155_v5 = vld [vmem:[#allocation8 + $0x1c0] ss:$8 sps:$4 sm:$0xff]   ;;  %1214 = vmatpush2.bf16.msra.mxu1 %v2164_v9  ;;  %v939_v9 = vld [vmem:[#allocation2 + $0x38] sm:$0x1] }
  0x9c   :  { %1215 = vmatprep.subr.bf16.mxu1 %v2172_v12 }
  0x9e   :  { %860 = vmatpush2.bf16.msra.mxu0 %v2086_v6  ;;  %v2163_v6 = vld [vmem:[#allocation8 + $0x1b4] ss:$8 sps:$4 sm:$0xff]  }
  0x9f   :  { %861 = vmatprep.subr.bf16.mxu0 %v2091_v7  ;;  %v2161_v7 = vld [vmem:[#allocation8 + $0x1b0] ss:$8 sps:$4 sm:$0xff]   ;;  %1216 = vmatpush2.bf16.msra.mxu1 %v2170_v13 }
  0xa0   :  { %1217 = vmatprep.subr.bf16.mxu1 %v2178_v17 }
  0xa2   :  { %862 = vmatpush2.bf16.msra.mxu0 %v2089_v10  ;;  %v2169_v10 = vld [vmem:[#allocation8 + $0x1a4] ss:$8 sps:$4 sm:$0xff]  }
  0xa3   :  { %863 = vmatprep.subr.bf16.mxu0 %v2094_v14  ;;  %v2175_v14 = vld [vmem:[#allocation8 + $0x194] ss:$8 sps:$4 sm:$0xff]   ;;  %1218 = vmatpush2.bf16.msra.mxu1 %v2176_v18 }
  0xa6   :  { %864 = vmatpush2.bf16.msra.mxu0 %v2092_v15  ;;  %v2173_v15 = vld [vmem:[#allocation8 + $0x190] ss:$8 sps:$4 sm:$0xff]  }
  0xa7   :  { %1396 = vmatprep.subr.bf16.mxu0 %v2097_v21  ;;  %v2184_v21 = vld [vmem:[#allocation8 + $0xa4] ss:$8 sps:$4 sm:$0xff]  }
  0xa8   :  { %1219 = vmatprep.subr.bf16.mxu1 %v2184_v21 }
  0xa9   :  { %1834 = vmatmul.mubr.msk.bf16.vlgmr.msra.gmra.mxu0 %vm2419_vm7, %v1833_v19  ;;  %v2181_v19 = vld [vmem:[#allocation8 + $0x184] ss:$8 sps:$4 sm:$0xff]  }
  0xaa   :  { %1397 = vmatpush1.bf16.msra.mxu0 %v2095_v20  ;;  %v2179_v20 = vld [vmem:[#allocation8 + $0x180] ss:$8 sps:$4 sm:$0xff]  }
  0xab   :  { %1398 = vmatprep.subr.bf16.mxu0 %v2100_v22  ;;  %v2182_v22 = vld [vmem:[#allocation8 + $0xa0] ss:$8 sps:$4 sm:$0xff]  }
  0xac   :  { %1220 = vmatpush2.bf16.msra.mxu1 %v2182_v22 }
  0xad   :  { %1221 = vmatprep.subr.bf16.mxu1 %v2187_v24 }
  0xae   :  { %1399 = vmatpush1.bf16.msra.mxu0 %v2098_v25  ;;  %v2190_v25 = vld [vmem:[#allocation8 + $0x84] ss:$8 sps:$4 sm:$0xff]  }
  0xaf   :  { %1400 = vmatprep.subr.bf16.mxu0 %v2103_v27  ;;  %v2193_v27 = vld [vmem:[#allocation8 + $0x274] ss:$8 sps:$4 sm:$0xff]  }
  0xb0   :  { %1222 = vmatpush2.bf16.msra.mxu1 %v2185_v23 }
  0xb1   :  { %1223 = vmatprep.subr.bf16.mxu1 %v2190_v25 }
  0xb2   :  { %1401 = vmatpush1.bf16.msra.mxu0 %v2101_v30 }
  0xb3   :  { %1402 = vmatprep.subr.bf16.mxu0 %v2109_v31 }
  0xb4   :  { %1224 = vmatpush2.bf16.msra.mxu1 %v2188_v26  ;;  %v2191_v26 = vld [vmem:[#allocation8 + $0x270] ss:$8 sps:$4 sm:$0xff]  }
  0xb5   :  { %1634 = vmatprep.subr.bf16.mxu1 %v2193_v27 }
  0xb6   :  { %1403 = vmatpush1.bf16.msra.mxu0 %v2107_v34  ;;  %v880_v34 = vld [vmem:[%s2481_s2] sm:$0x3] }
  0xb7   :  { %1404 = vmatprep.subr.bf16.mxu0 %v2115_v35  ;;  %v888_v35 = vsub.s32 1, %v2375_v46 }
  0xba   :  { %1405 = vmatpush1.bf16.msra.mxu0 %v2113_v38 }
  0xbb   :  { %1406 = vmatprep.subr.bf16.mxu0 %v2121_v40  ;;  %v885_v40 = vrot.slane %v880_v34, %v884_v33 }
  0xbe   :  { %1407 = vmatpush1.bf16.msra.mxu0 %v2119_v43 }
  0xbf   :  { %1408 = vmatprep.subr.bf16.mxu0 %v2127_v44  ;;  %v889_v44 = vrot.slane %v880_v34, %v888_v35  ;;  %v2199_v34 = vld [vmem:[#allocation8 + $0x254] ss:$8 sps:$4 sm:$0xff]  }
  0xc2   :  { %1409 = vmatpush1.bf16.msra.mxu0 %v2125_v48 }
  0xc3   :  { %1410 = vmatprep.subr.bf16.mxu0 %v2133_v50 }
  0xc6   :  { %1411 = vmatpush1.bf16.msra.mxu0 %v2131_v54 }
  0xc7   :  { %1412 = vmatprep.subr.bf16.mxu0 %v2139_v55 }
  0xca   :  { %1413 = vmatpush2.bf16.msra.mxu0 %v2137_v60 }
  0xcb   :  { %1414 = vmatprep.subr.bf16.mxu0 %v2145_v61 }
  0xce   :  { %1415 = vmatpush2.bf16.msra.mxu0 %v2143_v0 }
  0xcf   :  { %1416 = vmatprep.subr.bf16.mxu0 %v2151_v1 }
  0xd2   :  { %1417 = vmatpush2.bf16.msra.mxu0 %v2149_v3 }
  0xd3   :  { %1418 = vmatprep.subr.bf16.mxu0 %v2157_v4 }
  0xd6   :  { %1419 = vmatpush2.bf16.msra.mxu0 %v2155_v5  ;;  %v905_v5 = vld [vmem:[#allocation2] sm:$0x80] }
  0xd7   :  { %1420 = vmatprep.subr.bf16.mxu0 %v2163_v6 }
  0xda   :  { %1421 = vmatpush2.bf16.msra.mxu0 %v2161_v7  ;;  %v904_v7 = vld [vmem:[#allocation2 + $0x18] sm:$0x80] }
  0xdb   :  { %1422 = vmatprep.subr.bf16.mxu0 %v2169_v10  ;;  %v919_v10 = vrot.slane %v905_v5, 7  ;;  %v938_v5 = vld [vmem:[#allocation2 + $0x8] sm:$0x1] }
  0xde   :  { %1423 = vmatpush2.bf16.msra.mxu0 %v2167_v11 }
  0xdf   :  { %1424 = vmatprep.subr.bf16.mxu0 %v2175_v14 }
  0xe2   :  { %1425 = vmatpush2.bf16.msra.mxu0 %v2173_v15  ;;  %v916_v15 = vrot.slane %v904_v7, 7  ;;  %v2236_v7 = vld [vmem:[#allocation8 + $0x280] ss:$8 sps:$4 sm:$0xff]  }
  0xe3   :  { %1426 = vmatprep.subr.bf16.mxu0 %v2181_v19 }
  0xe6   :  { %1427 = vmatpush2.bf16.msra.mxu0 %v2179_v20  ;;  %v954_v20 = vrot.slane %v939_v9, 1  ;;  %v952_v9 = vrot.slane %v938_v5, 1 }
 0x129   :  { %v426_v28 = vpop.f32.mrf.mxu0 }
 0x12a   :  { %v629_v29 = vpop.f32.mrf.mxu1 }
 0x12b   :  { %v428_v30 = vpop.f32.mrf.mxu0  ;;  %v630_v38 = vadd.f32 %v629_v29, %v426_v28 }
 0x12c   :  { %v631_v31 = vpop.f32.mrf.mxu1 }
 0x12d   :  { %v430_v32 = vpop.f32.mrf.mxu0  ;;  %v632_v42 = vadd.f32 %v631_v31, %v428_v30  ;;  %v2196_v30 = vld [vmem:[#allocation8 + $0x264] ss:$8 sps:$4 sm:$0xff]  }
 0x12e   :  { %v633_v36 = vpop.f32.mrf.mxu1 }
 0x12f   :  { %v432_v37 = vpop.f32.mrf.mxu0  ;;  %v634_v48 = vadd.f32 %v633_v36, %v430_v32  ;;  %v2194_v32 = vld [vmem:[#allocation8 + $0x260] ss:$8 sps:$4 sm:$0xff]   ;;  %v2197_v36 = vld [vmem:[#allocation8 + $0x250] ss:$8 sps:$4 sm:$0xff]  }
 0x130   :  { %v635_v45 = vpop.f32.mrf.mxu1 }
 0x131   :  { %v636_v54 = vadd.f32 %v635_v45, %v432_v37  ;;  %v2202_v37 = vld [vmem:[#allocation8 + $0x244] ss:$8 sps:$4 sm:$0xff]  }
 0x132   :  { %v2214_v45 = vld [vmem:[#allocation8 + $0x204] ss:$8 sps:$4 sm:$0xff]  }
 0x169   :  { %v867_v41 = vpop.f32.mrf.mxu0 }
 0x16a   :  { %v876_v43 = vadd.f32 %v867_v41, %v630_v38  ;;  %v2200_v38 = vld [vmem:[#allocation8 + $0x240] ss:$8 sps:$4 sm:$0xff]   ;;  %v2203_v41 = vld [vmem:[#allocation8 + $0x230] ss:$8 sps:$4 sm:$0xff]  }
 0x16b   :  { %v869_v47 = vpop.f32.mrf.mxu0 }
 0x16c   :  { %v892_v50 = vadd.f32 %v885_v40, %v876_v43  ;;  %v877_v51 = vadd.f32 %v869_v47, %v632_v42  ;;  %v2206_v42 = vld [vmem:[#allocation8 + $0x220] ss:$8 sps:$4 sm:$0xff]   ;;  %v2211_v43 = vld [vmem:[#allocation8 + $0x214] ss:$8 sps:$4 sm:$0xff]  }
 0x16d   :  { %v871_v53 = vpop.f32.mrf.mxu0  ;;  %v2212_v47 = vld [vmem:[#allocation8 + $0x200] ss:$8 sps:$4 sm:$0xff]  }
 0x16e   :  { %v896_v55 = vmax.f32 %v892_v50, 0.0  ;;  %v893_v58 = vadd.f32 %v889_v44, %v877_v51  ;;  %v878_v59 = vadd.f32 %v871_v53, %v634_v48  ;;  %v2217_v48 = vld [vmem:[#allocation8 + $0x2f4] ss:$8 sps:$4 sm:$0xff]   ;;  %v2215_v50 = vld [vmem:[#allocation8 + $0x2f0] ss:$8 sps:$4 sm:$0xff]  }
 0x16f   :  { %v873_v60 = vpop.f32.mrf.mxu0  ;;  %v2220_v51 = vld [vmem:[#allocation8 + $0x2e4] ss:$8 sps:$4 sm:$0xff]   ;;  %v2218_v53 = vld [vmem:[#allocation8 + $0x2e0] ss:$8 sps:$4 sm:$0xff]  }
 0x170   :  { %900 = vst [vmem:[#allocation2 + $0x30] sm:$0xff] %v896_v55  ;;  %v897_v61 = vmax.f32 %v893_v58, 0.0  ;;  %v894_v62 = vadd.f32 %v885_v40, %v878_v59  ;;  %v879_v63 = vadd.f32 %v873_v60, %v636_v54  ;;  %v917_v17 = vrot.slane %v896_v55, 7  ;;  %v2205_v40 = vld [vmem:[#allocation8 + $0x234] ss:$8 sps:$4 sm:$0xff]  }
 0x171   :  { %v2223_v54 = vld [vmem:[#allocation8 + $0x2d4] ss:$8 sps:$4 sm:$0xff]   ;;  %v2226_v58 = vld [vmem:[#allocation8 + $0x2c4] ss:$8 sps:$4 sm:$0xff]   ;;  %v2224_v59 = vld [vmem:[#allocation8 + $0x2c0] ss:$8 sps:$4 sm:$0xff]  }
 0x172   :  { %901 = vst [vmem:[#allocation2 + $0x10] sm:$0xff] %v897_v61  ;;  %v2441_v0 = vmax.f32 %v894_v62, 0.0  ;;  %v895_v1 = vadd.f32 %v889_v44, %v879_v63  ;;  %v920_v11 = vrot.slane %v897_v61, 7  ;;  %v918_v27 = vsel %vm113_vm0, %v916_v15, %v917_v17  ;;  %v2209_v44 = vld [vmem:[#allocation8 + $0x210] ss:$8 sps:$4 sm:$0xff]  }
 0x173   :  { %v2229_v60 = vld [vmem:[#allocation8 + $0x2b4] ss:$8 sps:$4 sm:$0xff]   ;;  %v2232_v62 = vld [vmem:[#allocation8 + $0x2a4] ss:$8 sps:$4 sm:$0xff]   ;;  %v2230_v63 = vld [vmem:[#allocation8 + $0x2a0] ss:$8 sps:$4 sm:$0xff]  }
 0x174   :  { %902 = vst [vmem:[#allocation2 + $0x28] sm:$0xff] %v2441_v0  ;;  %v899_v2 = vmax.f32 %v895_v1, 0.0  ;;  %v964_v4 = vpack.c.bf16 %v2441_v0, %v896_v55  ;;  %v921_v22 = vsel %vm113_vm0, %v919_v10, %v920_v11  ;;  %v2221_v55 = vld [vmem:[#allocation8 + $0x2d0] ss:$8 sps:$4 sm:$0xff]   ;;  %v2235_v1 = vld [vmem:[#allocation8 + $0x294] ss:$8 sps:$4 sm:$0xff]  }
 0x176   :  { %903 = vst [vmem:[#allocation2 + $0x20] sm:$0xff] %v899_v2  ;;  %v965_v3 = vpack.c.bf16 %v899_v2, %v897_v61  ;;  %v950_v19 = vrot.slane %v899_v2, 1  ;;  %v2227_v61 = vld [vmem:[#allocation8 + $0x2b0] ss:$8 sps:$4 sm:$0xff]  }
 0x177   :  { %v934_v2 = vld [vmem:[#allocation2 + $0x30] sm:$0xfe] }
 0x178   :  { %1428 = vmatprep.mubr.bf16.mxu0 %v965_v3  ;;  %v955_v29 = vsel %vm144_vm6, %v950_v19, %v954_v20  ;;  %v2233_v3 = vld [vmem:[#allocation8 + $0x290] ss:$8 sps:$4 sm:$0xff]  }
 0x179   :  { %1429 = vmatmul.mubr.bf16.vlgmr.msra.gmra.mxu0 %v964_v4  ;;  %v935_v6 = vld [vmem:[#allocation2 + $0x10] sm:$0xfe]  ;;  %v2238_v4 = vld [vmem:[#allocation8 + $0x284] ss:$8 sps:$4 sm:$0xff]  }
 0x17a   :  { %v949_v13 = vrot.slane %v935_v6, 1  ;;  %v946_v6 = vrot.slane %v934_v2, 1 }
 0x17b   :  { %v908_v8 = vld [vmem:[#allocation2 + $0x28] sm:$0x7f] }
 0x17c   :  { %v922_v12 = vrot.slane %v908_v8, 7  ;;  %v951_v24 = vsel %vm144_vm6, %v949_v13, %v950_v19  ;;  %v947_v8 = vrot.slane %v2441_v0, 1  ;;  %v1681_v0 = vld [vmem:[%s2483_s4] sm:$0x3]  ;;  %s2332_s4 = smov [#allocation9]  }
 0x17d   :  { %v909_v14 = vld [vmem:[#allocation2 + $0x20] sm:$0x7f]  ;;  %v1938_v31 = vpack.c.bf16 %v955_v29, %v951_v24  ;;  %v1690_v39 = vrot.slane %v1681_v0, %v888_v35  ;;  %s1714_s12 = sshll.u32 %s2332_s4, 4  ;;  %s1715_s12 = int_to_ptr.vmem [resolvable:$true] %s1714_s12 }
 0x17e   :  { %v924_v18 = vrot.slane %v909_v14, 7  ;;  %v923_v21 = vsel %vm113_vm0, %v917_v17, %v922_v12  ;;  %v948_v10 = vsel %vm144_vm6, %v946_v6, %v947_v8  ;;  %s2299_s13 = scalar_lea.vmem %s1715_s12, 512  ;;  %p2304_p2 = scmp.lt.s32.totalorder %s1715_s12, %s1715_s12 }
 0x17f   :  { %v1871_v28 = vpack.c.bf16 %v923_v21, %v918_v27  ;;  %v1686_v21 = vrot.slane %v1681_v0, %v884_v33  ;;  %p2300_p1 = scmp.ne.s32.totalorder %s1715_s12, %s2299_s13  ;;  %p2305_p3 = scmp.lt.s32.totalorder %s2299_s13, %s2299_s13 }
 0x180   :  { %v925_v23 = vsel %vm113_vm0, %v920_v11, %v924_v18  ;;  %v953_v11 = vsel %vm144_vm6, %v947_v8, %v952_v9 }
 0x181   :  { %v1868_v25 = vpack.c.bf16 %v925_v23, %v921_v22  ;;  %v1941_v12 = vpack.c.bf16 %v953_v11, %v948_v10  ;;  %p2306_p4 = por %p2305_p3, %p2304_p2 }
 0x183   :  { %1869 = vmatprep.mubr.msk.bf16.mxu1 %vm2405_vm3, %v1868_v25  ;;  %p2307_p5 = pnand %p2306_p4, %p2300_p1 }
 0x184   :  { %1872 = vmatmul.mubr.msk.bf16.vlgmr.msra.gmra.mxu1 %vm2405_vm3, %v1871_v28 }
 0x185   :  { %1635 = vmatpush1.bf16.msra.mxu1 %v2191_v26  ;;  %1939 = vmatprep.mubr.msk.bf16.mxu1 %vm2419_vm7, %v1938_v31 }
 0x186   :  { %1636 = vmatprep.subr.bf16.mxu1 %v2196_v30 }
 0x189   :  { %1637 = vmatpush1.bf16.msra.mxu1 %v2194_v32 }
 0x18a   :  { %1638 = vmatprep.subr.bf16.mxu1 %v2199_v34 }
 0x18d   :  { %1639 = vmatpush1.bf16.msra.mxu1 %v2197_v36 }
 0x18e   :  { %1640 = vmatprep.subr.bf16.mxu1 %v2202_v37 }
 0x191   :  { %1641 = vmatpush1.bf16.msra.mxu1 %v2200_v38 }
 0x192   :  { %1642 = vmatprep.subr.bf16.mxu1 %v2205_v40 }
 0x195   :  { %1643 = vmatpush1.bf16.msra.mxu1 %v2203_v41 }
 0x196   :  { %1644 = vmatprep.subr.bf16.mxu1 %v2208_v16 }
 0x199   :  { %1645 = vmatpush1.bf16.msra.mxu1 %v2206_v42 }
 0x19a   :  { %1646 = vmatprep.subr.bf16.mxu1 %v2211_v43 }
 0x19d   :  { %1647 = vmatpush1.bf16.msra.mxu1 %v2209_v44 }
 0x19e   :  { %1648 = vmatprep.subr.bf16.mxu1 %v2214_v45 }
 0x1a1   :  { %1649 = vmatpush1.bf16.msra.mxu1 %v2212_v47 }
 0x1a2   :  { %1650 = vmatprep.subr.bf16.mxu1 %v2217_v48 }
 0x1a5   :  { %1651 = vmatpush2.bf16.msra.mxu1 %v2215_v50 }
 0x1a6   :  { %1652 = vmatprep.subr.bf16.mxu1 %v2220_v51 }
 0x1a9   :  { %1653 = vmatpush2.bf16.msra.mxu1 %v2218_v53 }
 0x1aa   :  { %1654 = vmatprep.subr.bf16.mxu1 %v2223_v54 }
 0x1ad   :  { %1655 = vmatpush2.bf16.msra.mxu1 %v2221_v55 }
 0x1ae   :  { %1656 = vmatprep.subr.bf16.mxu1 %v2226_v58 }
 0x1b1   :  { %1657 = vmatpush2.bf16.msra.mxu1 %v2224_v59 }
 0x1b2   :  { %1658 = vmatprep.subr.bf16.mxu1 %v2229_v60 }
 0x1b5   :  { %1659 = vmatpush2.bf16.msra.mxu1 %v2227_v61 }
 0x1b6   :  { %1660 = vmatprep.subr.bf16.mxu1 %v2232_v62 }
 0x1b9   :  { %1661 = vmatpush2.bf16.msra.mxu1 %v2230_v63 }
 0x1ba   :  { %1662 = vmatprep.subr.bf16.mxu1 %v2235_v1 }
 0x1bd   :  { %1663 = vmatpush2.bf16.msra.mxu1 %v2233_v3 }
 0x1be   :  { %1664 = vmatprep.subr.bf16.mxu1 %v2238_v4 }
 0x1c1   :  { %1665 = vmatpush2.bf16.msra.mxu1 %v2236_v7 }
 0x1c4   :  { %1942 = vmatmul.mubr.msk.bf16.vlgmr.msra.gmra.mxu1 %vm2419_vm7, %v1941_v12 }
 0x239   :  { %v1430_v15 = vpop.f32.mrf.mxu0 }
 0x23b   :  { %v1432_v18 = vpop.f32.mrf.mxu0 }
 0x23d   :  { %v1434_v22 = vpop.f32.mrf.mxu0 }
 0x23f   :  { %v1436_v30 = vpop.f32.mrf.mxu0 }
 0x244   :  { %v1227_v13 = vpop.f32.mrf.mxu1 }
 0x245   :  { %v1431_v20 = vadd.f32 %v1430_v15, %v1227_v13 }
 0x246   :  { %v1229_v14 = vpop.f32.mrf.mxu1 }
 0x247   :  { %v1433_v24 = vadd.f32 %v1432_v18, %v1229_v14 }
 0x248   :  { %v1231_v17 = vpop.f32.mrf.mxu1 }
 0x249   :  { %v1435_v27 = vadd.f32 %v1434_v22, %v1231_v17 }
 0x24a   :  { %v1233_v19 = vpop.f32.mrf.mxu1 }
 0x24b   :  { %v1437_v32 = vadd.f32 %v1436_v30, %v1233_v19 }
 0x284   :  { %v1668_v23 = vpop.f32.mrf.mxu1 }
 0x285   :  { %v1677_v25 = vadd.f32 %v1668_v23, %v1431_v20 }
 0x286   :  { %v1670_v26 = vpop.f32.mrf.mxu1 }
 0x287   :  { %v1693_v28 = vadd.f32 %v1686_v21, %v1677_v25  ;;  %v1678_v29 = vadd.f32 %v1670_v26, %v1433_v24 }
 0x288   :  { %v1672_v31 = vpop.f32.mrf.mxu1 }
 0x289   :  { %v1697_v34 = vadd.f32 %v1693_v28, %v2388_v56  ;;  %v1694_v36 = vadd.f32 %v1690_v39, %v1678_v29  ;;  %v1679_v37 = vadd.f32 %v1672_v31, %v1435_v27 }
 0x28a   :  { %v1674_v38 = vpop.f32.mrf.mxu1 }
 0x28b   :  { %v1701_v33 = vmax.f32 %v1697_v34, 0.0  ;;  %v1698_v40 = vadd.f32 %v1694_v36, %v2377_v49  ;;  %v1695_v41 = vadd.f32 %v1686_v21, %v1679_v37  ;;  %v1680_v16 = vadd.f32 %v1674_v38, %v1437_v32 }
 0x28d   :  { %1705 = vst [vmem:[#allocation9] sm:$0xff] %v1701_v33  ;;  %v1702_v46 = vmax.f32 %v1698_v40, 0.0  ;;  %v1699_v35 = vadd.f32 %v1695_v41, %v2390_v57  ;;  %v1696_v42 = vadd.f32 %v1690_v39, %v1680_v16 }
 0x28f   :  { %1706 = vst [vmem:[#allocation9 + $0x8] sm:$0xff] %v1702_v46  ;;  %v1703_v43 = vmax.f32 %v1699_v35, 0.0  ;;  %v1700_v44 = vadd.f32 %v1696_v42, %v2379_v52 }
 0x291   :  { %1707 = vst [vmem:[#allocation9 + $0x10] sm:$0xff] %v1703_v43  ;;  %v1704_v56 = vmax.f32 %v1700_v44, 0.0 }
 0x293   :  { %1708 = vst [vmem:[#allocation9 + $0x18] sm:$0xff] %v1704_v56 }
 0x294   :  { %2310 = shalt.err (!%p2307_p5)
}
 0x295   :  { %1720 = dma.vmem_to_hbm [thread:$0]  %s1715_s12, 512, %s2484_s5, [#allocation5], %s2329_s28, %s2329_s28, %s2330_s29  }
 0x296   :  { %2323 = dma.done.wait [#allocation5], 512  }
 0x297   :  { %2324 = vsyncadd [#allocation5], 4294966784 }
 0x298   :  { %1724 = vsyncpa [#allocation4], 1 }
 0x299   :  { %1725 = vsyncpa [#allocation7], 1 }
 0x29a   :  { %1726 = vsyncpa [#allocation5], 1 }

</bundles_post_ra>
